<compile_context>
chip_gen: v7x
topology: tpu7x:2x2x1
jax: 0.10.0
libtpu: 0.0.40
codegen_flags: <defaults>
</compile_context>

<pallas_src>
import functools

import jax
import jax.numpy as jnp
from jax.experimental import pallas as pl
from jax.experimental.pallas import tpu as pltpu


def _round_up(v, m):
    return -(-v // m) * m


def _plan_axis(extent, tile, align):
    """Pick a hardware-aligned tile and a padded extent that the tile divides."""
    padded = _round_up(extent, align)
    t = min(_round_up(min(tile, padded), align), padded)
    padded = _round_up(padded, t)
    return t, padded


# ---------------------------------------------------------------------------
# Kernels.  Weight arrives pre-transposed as (D, C): standard (tm,tk)x(tk,tn)
# MXU contraction — no per-tile transpose on any generation.
# ---------------------------------------------------------------------------
def _linear_kernel_single_k(x_ref, w_ref, b_ref, o_ref):
    """Whole K in one tile: no accumulator, single fused bias-add + store."""
    o_ref[...] = (
        jnp.dot(x_ref[...], w_ref[...], preferred_element_type=jnp.float32)
        + b_ref[...]
    ).astype(o_ref.dtype)


def _linear_kernel_acc_out(x_ref, w_ref, b_ref, o_ref):
    """K split across grid axis 2; o_ref is f32 and its block index is
    k-invariant, so accumulate directly into it (no VMEM scratch)."""
    k = pl.program_id(2)

    @pl.when(k == 0)
    def _():
        o_ref[...] = jnp.zeros_like(o_ref)

    o_ref[...] += jnp.dot(x_ref[...], w_ref[...],
                          preferred_element_type=jnp.float32)

    @pl.when(k == pl.num_programs(2) - 1)
    def _():
        o_ref[...] += b_ref[...]


# ---------------------------------------------------------------------------
# Padded launcher.  xp: (n_pad, d_pad) compute dtype, wp: (d_pad, c_pad)
# compute dtype, bp: (1, c_pad) f32.  All padded extents are exact multiples
# of their tiles, so every store is unmasked and the K tail is all zeros.
# ---------------------------------------------------------------------------
@functools.partial(jax.jit, static_argnames=("tm_", "tn_", "tk_", "out_dtype"))
def _pallas_linear_padded(xp, wp, bp, *, tm_, tn_, tk_, out_dtype):
    n_pad, d_pad = xp.shape
    d_pad2, c_pad = wp.shape
    assert d_pad == d_pad2, "padded in_dim mismatch"

    grid = (n_pad // tm_, c_pad // tn_, d_pad // tk_)
    k_steps = grid[2]

    if k_steps == 1:
        kernel = _linear_kernel_single_k
        o_dtype = out_dtype
    else:
        # Accumulate in the output block itself -> it must be f32.
        kernel = _linear_kernel_acc_out
        o_dtype = jnp.float32

    in_itemsize = jnp.dtype(xp.dtype).itemsize
    cost = pl.CostEstimate(
        flops=2 * n_pad * d_pad * c_pad,
        transcendentals=0,
        bytes_accessed=(n_pad * d_pad + c_pad * d_pad) * in_itemsize
        + n_pad * c_pad * jnp.dtype(o_dtype).itemsize
        + c_pad * 4,
    )

    out = pl.pallas_call(
        kernel,
        out_shape=jax.ShapeDtypeStruct((n_pad, c_pad), o_dtype),
        grid_spec=pltpu.PrefetchScalarGridSpec(
            num_scalar_prefetch=0,
            grid=grid,
            in_specs=[
                pl.BlockSpec((tm_, tk_), lambda i, j, k: (i, k)),   # x tile
                pl.BlockSpec((tk_, tn_), lambda i, j, k: (k, j)),   # weight (D,C)
                pl.BlockSpec((1, tn_), lambda i, j, k: (0, j)),     # bias row
            ],
            out_specs=pl.BlockSpec((tm_, tn_), lambda i, j, k: (i, j)),
        ),
        compiler_params=pltpu.CompilerParams(
            # (i, j) shard across the two v7x TensorCores; K stays serial.
            dimension_semantics=("parallel", "parallel", "arbitrary"),
            # ~7 MiB double-buffered footprint at the default tiles; 32 MiB is
            # safe on v5e/v6e (128 MiB VMEM) and on v7x (64 MiB VMEM).
            vmem_limit_bytes=32 * 1024 * 1024,
        ),
        cost_estimate=cost,
    )(xp, wp, bp)

    if jnp.dtype(o_dtype) != jnp.dtype(out_dtype):
        out = out.astype(out_dtype)
    return out


# ---------------------------------------------------------------------------
# One-time weight-side prep (call once, cache the result).
# ---------------------------------------------------------------------------
def prep_linear_params(weight, bias, *, tn=512, tk=2048,
                       compute_dtype=jnp.bfloat16):
    """weight: (C, D) PyTorch layout, bias: (C,).
    Returns (wp, bp, tn_, tk_) with wp = padded bf16 (d_pad, c_pad) and
    bp = padded f32 (1, c_pad)."""
    C, D = weight.shape
    tk_, d_pad = _plan_axis(D, tk, 128)   # lane-aligned K tile / padded K
    tn_, c_pad = _plan_axis(C, tn, 128)   # lane-aligned class tile / padded C

    wp = weight.T.astype(compute_dtype)   # one-time transpose to (D, C)
    if (d_pad, c_pad) != (D, C):
        wp = jnp.pad(wp, ((0, d_pad - D), (0, c_pad - C)))
    bp = bias.astype(jnp.float32).reshape(1, C)
    if c_pad != C:
        bp = jnp.pad(bp, ((0, 0), (0, c_pad - C)))
    return wp, bp, tn_, tk_


def pallas_linear_prepped(x, wp, bp, out_cols, *, tn_, tk_, tm=256,
                          compute_dtype=jnp.bfloat16):
    """cls_score = x @ W.T + b using a pre-prepped (transposed/cast/padded)
    weight. Only the activation is cast / padded per call."""
    N, D = x.shape
    d_pad, c_pad = wp.shape
    tm_, n_pad = _plan_axis(N, tm, 8)     # sublane-aligned batch tile

    xc = x.astype(compute_dtype)
    if (n_pad, d_pad) != (N, D):
        xc = jnp.pad(xc, ((0, n_pad - N), (0, d_pad - D)))

    out = _pallas_linear_padded(xc, wp, bp, tm_=tm_, tn_=tn_, tk_=tk_,
                                out_dtype=x.dtype)
    if (n_pad, c_pad) != (N, out_cols):
        out = out[:N, :out_cols]
    return out


def pallas_linear(x, weight, bias, *, tm=256, tn=512, tk=2048,
                  compute_dtype=jnp.bfloat16):
    """Convenience path (preps the weight per call) — for tests / one-offs.
    Production use should prep once via prep_linear_params (see Classifier)."""
    wp, bp, tn_, tk_ = prep_linear_params(
        weight, bias, tn=tn, tk=tk, compute_dtype=compute_dtype)
    return pallas_linear_prepped(
        x, wp, bp, weight.shape[0], tn_=tn_, tk_=tk_, tm=tm,
        compute_dtype=compute_dtype)


class Classifier:
    """JAX/Pallas port of the PyTorch Classifier module ("bn + fc").

    Note: the reference __init__ touches `self.bn.bias` but never defines or
    uses a BN layer in forward, so only the Linear classifier is materialized.
    """

    def __init__(self, in_dim, class_num, key, compute_dtype=jnp.bfloat16,
                 tn=512, tk=2048):
        self.in_dim = in_dim
        self.class_num = class_num
        self.compute_dtype = compute_dtype
        # weights_init_classifier: normal_(std=0.001) weight, zero bias.
        self.weight = 0.001 * jax.random.normal(
            key, (class_num, in_dim), dtype=jnp.float32)
        self.bias = jnp.zeros((class_num,), dtype=jnp.float32)
        # One-time weight-side prep (transpose + bf16 cast + pad), cached so
        # no per-call HBM round trip of the constant parameter.
        self._wp, self._bp, self._tn_, self._tk_ = prep_linear_params(
            self.weight, self.bias, tn=tn, tk=tk, compute_dtype=compute_dtype)

    def __call__(self, x, training=True):
        feature = x
        if not training:
            return (feature, None)
        cls_score = pallas_linear_prepped(
            x, self._wp, self._bp, self.class_num,
            tn_=self._tn_, tk_=self._tk_, compute_dtype=self.compute_dtype)
        return (feature, cls_score)


if __name__ == "__main__":
    key = jax.random.PRNGKey(0)
    k_x, k_w, k_x2, k_w2 = jax.random.split(key, 4)

    # ---- Case 1: tiny module-demo shapes (single-K fast path) -------------
    batch, in_dim, class_num = 8, 32, 16
    x = jax.random.normal(k_x, (batch, in_dim), dtype=jnp.float32)
    model = Classifier(in_dim, class_num, k_w)

    feature, cls_score = model(x, training=True)
    feature = jax.block_until_ready(feature)
    cls_score = jax.block_until_ready(cls_score)

    feat_eval, none_score = model(x, training=False)
    assert none_score is None
    assert jnp.array_equal(feat_eval, x)

    # Reference with the same bf16-inputs / f32-accumulation recipe.
    ref = (
        jnp.dot(x.astype(jnp.bfloat16), model.weight.astype(jnp.bfloat16).T,
                preferred_element_type=jnp.float32)
        + model.bias
    )
    assert feature.shape == (batch, in_dim)
    assert cls_score.shape == (batch, class_num)
    assert jnp.array_equal(feature, x)
    assert jnp.allclose(cls_score, ref, atol=1e-4, rtol=1e-2)

    # ---- Case 2: larger shapes, default tiles (tk_=1024 -> still single-K) -
    n2, d2, c2 = 16, 1024, 384
    x2 = jax.random.normal(k_x2, (n2, d2), dtype=jnp.float32)
    w2 = 0.001 * jax.random.normal(k_w2, (c2, d2), dtype=jnp.float32)
    b2 = jnp.zeros((c2,), dtype=jnp.float32)
    ref2 = (
        jnp.dot(x2.astype(jnp.bfloat16), w2.astype(jnp.bfloat16).T,
                preferred_element_type=jnp.float32)
        + b2
    )
    out2 = jax.block_until_ready(pallas_linear(x2, w2, b2))
    assert out2.shape == (n2, c2)
    assert jnp.allclose(out2, ref2, atol=1e-4, rtol=1e-2)

    # ---- Case 3: forced K-split (tk=512 -> 2 steps, accumulate into o_ref) -
    out3 = jax.block_until_ready(
        pallas_linear(x2, w2, b2, tm=8, tn=256, tk=512))
    assert out3.shape == (n2, c2)
    assert jnp.allclose(out3, ref2, atol=1e-4, rtol=1e-2)

    print("KERNEL_OK")
</pallas_src>

<mosaic_0001>
module attributes {stable_mosaic.version = 11 : i64} {
  func.func @_linear_kernel_single_k(%arg0: i32, %arg1: i32, %arg2: i32, %arg3: memref<8x128xbf16, #tpu.memory_space<vmem>>, %arg4: memref<128x128xbf16, #tpu.memory_space<vmem>>, %arg5: memref<1x128xf32, #tpu.memory_space<vmem>>, %arg6: memref<8x128xf32, #tpu.memory_space<vmem>>) attributes {dimension_semantics = [#tpu.dimension_semantics<parallel>, #tpu.dimension_semantics<parallel>, #tpu.dimension_semantics<arbitrary>], iteration_bounds = array<i64: 1, 1, 1>, scalar_prefetch = 0 : i64, scratch_operands = 0 : i64, tpu.core_type = #tpu.core_type<tc>, window_params = [{transform_indices = @transform_0, window_bounds = array<i64: 8, 128>}, {transform_indices = @transform_1, window_bounds = array<i64: 128, 128>}, {transform_indices = @transform_2, window_bounds = array<i64: 1, 128>}, {transform_indices = @transform_3, window_bounds = array<i64: 8, 128>}]} {
    %c0 = arith.constant 0 : index
    %c0_0 = arith.constant 0 : index
    %0 = vector.load %arg3[%c0, %c0_0] : memref<8x128xbf16, #tpu.memory_space<vmem>>, vector<8x128xbf16>
    %c0_1 = arith.constant 0 : index
    %c0_2 = arith.constant 0 : index
    %1 = vector.load %arg4[%c0_1, %c0_2] : memref<128x128xbf16, #tpu.memory_space<vmem>>, vector<128x128xbf16>
    %cst = arith.constant dense<0.000000e+00> : vector<8x128xf32>
    %2 = tpu.matmul %0, %1, %cst {dimension_numbers = #tpu.dot_dimension_numbers<[1], [0], [0], [1], [0, 0, 1, 1], [], []>} : vector<8x128xbf16>, vector<128x128xbf16>, vector<8x128xf32> -> vector<8x128xf32>
    %c0_3 = arith.constant 0 : index
    %c0_4 = arith.constant 0 : index
    %3 = vector.load %arg5[%c0_3, %c0_4] : memref<1x128xf32, #tpu.memory_space<vmem>>, vector<1x128xf32>
    %4 = vector.broadcast %3 : vector<1x128xf32> to vector<8x128xf32>
    %5 = arith.addf %2, %4 : vector<8x128xf32>
    %c0_5 = arith.constant 0 : index
    %c0_6 = arith.constant 0 : index
    %6 = vector.load %arg6[%c0_5, %c0_6] : memref<8x128xf32, #tpu.memory_space<vmem>>, vector<8x128xf32>
    tpu.vector_store %arg6[%c0_5, %c0_6], %5 {strides = array<i32>} : memref<8x128xf32, #tpu.memory_space<vmem>>, vector<8x128xf32>,
    return
  }
  func.func @transform_0(%arg0: i32, %arg1: i32, %arg2: i32) -> (i32, i32) {
    %c0_i32 = arith.constant 0 : i32
    return %arg0, %arg2 : i32, i32
  }
  func.func @transform_1(%arg0: i32, %arg1: i32, %arg2: i32) -> (i32, i32) {
    %c0_i32 = arith.constant 0 : i32
    return %arg2, %arg1 : i32, i32
  }
  func.func @transform_2(%arg0: i32, %arg1: i32, %arg2: i32) -> (i32, i32) {
    %c0_i32 = arith.constant 0 : i32
    %c0_i32_0 = arith.constant 0 : i32
    return %c0_i32, %arg1 : i32, i32
  }
  func.func @transform_3(%arg0: i32, %arg1: i32, %arg2: i32) -> (i32, i32) {
    %c0_i32 = arith.constant 0 : i32
    return %arg0, %arg1 : i32, i32
  }
}

</mosaic_0001>

<bundles_post_ra>
// kernel: _pallas_linear_padded.1
= control target key start
LH: loop header
LB: loop body
LE: loop exit
PB: predicated region body
PF: predicated region fallthrough
CT: control target
= control target key end

     0   :  { %8 = vsyncpa [#allocation3], 0  ;;  %s369_s0 = inlined_call_operand.hbm [shape: bf16[8,128], index: 0, kind: input, shape index: {}]   ;;  %s370_s1 = inlined_call_operand.hbm [shape: bf16[128,128], index: 1, kind: input, shape index: {}]   ;;  %s371_s2 = inlined_call_operand.vmem [shape: f32[1,128], index: 2, kind: input, shape index: {}]   ;;  %s372_s3 = inlined_call_operand.hbm [shape: f32[8,128], index: 3, kind: output, shape index: {}]  }
   0x1   :  { %9 = vsyncpa [#allocation6], 0 }
   0x2   :  { %10 = vsyncpa [#allocation4], 0  ;;  %s296_s12 = smov [#allocation2]   ;;  %s297_s14 = smov [#allocation5]  }
   0x3   :  { %s17_s13 = sshll.u32 %s296_s12, 4  ;;  %s26_s15 = sshll.u32 %s297_s14, 4  ;;  %s18_s13 = int_to_ptr.vmem [resolvable:$true] %s17_s13  ;;  %s323_s15 = int_to_ptr.vmem [resolvable:$true] %s26_s15 }
   0x4   :  { %s224_s18 = scalar_lea.hbm %s369_s0, 64 }
   0x5   :  { %p225_p0 = scmp.ne.s32.totalorder %s369_s0, %s224_s18  ;;  %p228_p1 = scmp.lt.u32.totalorder %s224_s18, %s369_s0 }
   0x7   :  { %p230_p2 = pnand %p228_p1, %p225_p0 }
   0x9   :  { %233 = shalt.err (!%p230_p2)
}
   0xa   :  { %s234_s23 = scalar_lea.vmem %s18_s13, 64  ;;  %p239_p4 = scmp.lt.s32.totalorder %s18_s13, %s18_s13 }
   0xb   :  { %p235_p3 = scmp.ne.s32.totalorder %s18_s13, %s234_s23  ;;  %p240_p5 = scmp.lt.s32.totalorder %s234_s23, %s234_s23 }
   0xd   :  { %p241_p6 = por %p240_p5, %p239_p4 }
   0xf   :  { %p242_p7 = pnand %p241_p6, %p235_p3 }
  0x11   :  { %245 = shalt.err (!%p242_p7)
}
  0x12   :  { %20 = dma.hbm_to_vmem [thread:$0]  %s369_s0, 64, %s18_s13, [#allocation3]  }
  0x13   :  { %s246_s28 = scalar_lea.hbm %s370_s1, 1024 }
  0x14   :  { %p247_p8 = scmp.ne.s32.totalorder %s370_s1, %s246_s28  ;;  %p250_p9 = scmp.lt.u32.totalorder %s246_s28, %s370_s1 }
  0x16   :  { %p252_p10 = pnand %p250_p9, %p247_p8 }
  0x18   :  { %255 = shalt.err (!%p252_p10)
}
  0x19   :  { %s256_s6 = scalar_lea.vmem %s323_s15, 1024  ;;  %p261_p12 = scmp.lt.s32.totalorder %s323_s15, %s323_s15 }
  0x1a   :  { %p257_p11 = scmp.ne.s32.totalorder %s323_s15, %s256_s6  ;;  %p262_p13 = scmp.lt.s32.totalorder %s256_s6, %s256_s6 }
  0x1c   :  { %p263_p0 = por %p262_p13, %p261_p12 }
  0x1e   :  { %p264_p1 = pnand %p263_p0, %p257_p11 }
  0x20   :  { %267 = shalt.err (!%p264_p1)
}
  0x21   :  { %s298_s0 = smov 64   ;;  %s299_s7 = smov 4  }
  0x22   :  { %32 = dma.hbm_to_vmem [thread:$0]  %s370_s1, 1024, %s323_s15, [#allocation6], %s298_s0, %s298_s0, %s299_s7  }
  0x23   :  { %290 = dma.done.wait [#allocation3], 64  }
  0x24   :  { %291 = vsyncadd [#allocation3], 4294967232 }
  0x25   :  { %292 = dma.done.wait [#allocation6], 1024  }
  0x26   :  { %293 = vsyncadd [#allocation6], 4294966272  ;;  %v300_v0 = vmov 0.0   ;;  %vm301_vm0 = vmmov 0   ;;  %v216_v1 = vld [vmem:[#allocation5] sm:$0xff]   ;;  %v217_v2 = vld [vmem:[#allocation5 + $0x8] sm:$0xff]  }
  0x27   :  { %189 = vmatprep.subr.bf16.mxu0 %v300_v0  ;;  %205 = vmatprep.mubr.msk.bf16.mxu0 %vm301_vm0, %v300_v0  ;;  %v218_v3 = vld [vmem:[#allocation5 + $0x10] sm:$0xff]   ;;  %v219_v4 = vld [vmem:[#allocation5 + $0x18] sm:$0xff]   ;;  %v220_v5 = vld [vmem:[#allocation5 + $0x20] sm:$0xff]   ;;  %s302_s11 = smov [#allocation7]  }
  0x28   :  { %190 = vmatpush3.bf16.msra.mxu0 %v216_v1  ;;  %v221_v6 = vld [vmem:[#allocation5 + $0x28] sm:$0xff]   ;;  %v222_v7 = vld [vmem:[#allocation5 + $0x30] sm:$0xff]   ;;  %v223_v8 = vld [vmem:[#allocation5 + $0x38] sm:$0xff]   ;;  %s161_s12 = sshll.u32 %s302_s11, 4  ;;  %s162_s12 = int_to_ptr.vmem [resolvable:$true] %s161_s12 }
  0x29   :  { %191 = vmatprep.subr.bf16.mxu0 %v300_v0  ;;  %v42_v9 = vld [vmem:[#allocation2] sm:$0xf]  ;;  %s268_s13 = scalar_lea.vmem %s162_s12, 128  ;;  %p273_p3 = scmp.lt.s32.totalorder %s162_s12, %s162_s12 }
  0x2a   :  { %v171_v10 = vld [vmem:[%s371_s2] ss:$0 sm:$0xff]  ;;  %p269_p2 = scmp.ne.s32.totalorder %s162_s12, %s268_s13  ;;  %p274_p4 = scmp.lt.s32.totalorder %s268_s13, %s268_s13 }
  0x2c   :  { %192 = vmatpush3.bf16.msra.mxu0 %v217_v2  ;;  %p275_p5 = por %p274_p4, %p273_p3 }
  0x2d   :  { %193 = vmatprep.subr.bf16.mxu0 %v300_v0 }
  0x2e   :  { %p276_p6 = pnand %p275_p5, %p269_p2 }
  0x30   :  { %194 = vmatpush3.bf16.msra.mxu0 %v218_v3 }
  0x31   :  { %195 = vmatprep.subr.bf16.mxu0 %v300_v0 }
  0x34   :  { %196 = vmatpush3.bf16.msra.mxu0 %v219_v4 }
  0x35   :  { %197 = vmatprep.subr.bf16.mxu0 %v300_v0 }
  0x38   :  { %198 = vmatpush3.bf16.msra.mxu0 %v220_v5 }
  0x39   :  { %199 = vmatprep.subr.bf16.mxu0 %v300_v0 }
  0x3c   :  { %200 = vmatpush3.bf16.msra.mxu0 %v221_v6 }
  0x3d   :  { %201 = vmatprep.subr.bf16.mxu0 %v300_v0 }
  0x40   :  { %202 = vmatpush3.bf16.msra.mxu0 %v222_v7 }
  0x41   :  { %203 = vmatprep.subr.bf16.mxu0 %v300_v0 }
  0x44   :  { %204 = vmatpush3.bf16.msra.mxu0 %v223_v8 }
  0x47   :  { %206 = vmatmul.mubr.bf16.vlgmr.msra.gmra.mrb[0].mxu0 %v42_v9 }
 0x11a   :  { %v148_v11 = vpop.f32.mrb[0].mxu0 }
 0x11b   :  { %v149_v12 = vadd.f32 %v171_v10, %v148_v11  ;;  %v207_v13 = vpop.f32.mrb[1].mxu0 }
 0x11c   :  { %v151_v14 = vpop.f32.mrb[2].mxu0 }
 0x11d   :  { %154 = vst [vmem:[#allocation7] sm:$0xff] %v149_v12  ;;  %v208_v15 = vpop.f32.mrb[3].mxu0 }
 0x11e   :  { %279 = shalt.err (!%p276_p6)
}
 0x11f   :  { %s280_s2 = scalar_lea.hbm %s372_s3, 128 }
 0x120   :  { %p281_p7 = scmp.ne.s32.totalorder %s372_s3, %s280_s2  ;;  %p284_p8 = scmp.lt.u32.totalorder %s280_s2, %s372_s3 }
 0x122   :  { %p286_p9 = pnand %p284_p8, %p281_p7 }
 0x124   :  { %289 = shalt.err (!%p286_p9)
}
 0x125   :  { %164 = dma.vmem_to_hbm [thread:$0]  %s162_s12, 128, %s372_s3, [#allocation4]  }
 0x126   :  { %294 = dma.done.wait [#allocation4], 128  }
 0x127   :  { %295 = vsyncadd [#allocation4], 4294967168 }
 0x128   :  { %168 = vsyncpa [#allocation3], 1 }
 0x129   :  { %169 = vsyncpa [#allocation6], 1 }
 0x12a   :  { %170 = vsyncpa [#allocation4], 1 }

</bundles_post_ra>
